<compile_context>
chip_gen: v7x
topology: tpu7x:2x2x1
jax: 0.10.0
libtpu: 0.0.40
codegen_flags: <defaults>
</compile_context>

<pallas_src>
import functools
import math

import jax
import jax.numpy as jnp
from jax import lax
from jax.experimental import pallas as pl
from jax.experimental.pallas import tpu as pltpu

_EPS = 1e-12


def _round_up(x, m):
    return ((x + m - 1) // m) * m


def _vmem_capacity_bytes():
    try:
        info = pltpu.get_tpu_info()
        cap = getattr(info, "vmem_capacity_bytes", None)
        if cap:
            return int(cap)
    except Exception:
        pass
    return 128 * 1024 * 1024  # v5e / v6e physical VMEM


def _working_set_bytes(batch, feat, tile_c, x_item, w_item):
    return (2 * tile_c * feat * w_item   # double-buffered W tile (compute dtype)
            + 2 * batch * tile_c * 4     # double-buffered logits out tile (f32)
            + 2 * batch * feat * x_item  # resident xn block (count both buffers)
            + 2 * tile_c * 4             # inv-norm (1, TILE_C) block
            + 4 * batch * 4              # per-tile partial-sum out tiles
            + (1 << 20))                 # headroom for masks / temporaries


def _pick_tile_c(c_pad, batch, feat, x_item, w_item, budget):
    """Largest 128-multiple TILE_C that divides c_pad and fits the byte budget."""
    fixed = 2 * batch * feat * x_item + (1 << 20)
    per_class = 2 * feat * w_item + 2 * batch * 4 + 2 * 4
    max_c = max(128, (budget - fixed) // per_class)
    max_c = max(128, min((max_c // 128) * 128, c_pad))
    k = c_pad // 128
    for d in range(max_c // 128, 0, -1):
        if k % d == 0:
            return d * 128
    return 128


# ---------------------------------------------------------------------------
# small helper kernel: L2-normalize rows of x once (outside the class grid),
# emitted directly in compute_dtype so the resident xn block is narrow.
# ---------------------------------------------------------------------------
def _rownorm_kernel(x_ref, o_ref):
    x = x_ref[...].astype(jnp.float32)
    norm = jnp.sqrt(jnp.sum(x * x, axis=-1, keepdims=True))
    o_ref[...] = (x / jnp.maximum(norm, _EPS)).astype(o_ref.dtype)


def _l2_normalize_rows(x, out_dtype):
    B, F = x.shape
    return pl.pallas_call(
        _rownorm_kernel,
        out_shape=jax.ShapeDtypeStruct((B, F), out_dtype),
        in_specs=[pl.BlockSpec((B, F), lambda: (0, 0))],
        out_specs=pl.BlockSpec((B, F), lambda: (0, 0)),
    )(x)


# ---------------------------------------------------------------------------
# main kernels: one (TILE_C, F) weight tile per grid step
# ---------------------------------------------------------------------------
def _cosine_tile(xn_ref, w_ref, inv_ref):
    # xn and W already live in compute_dtype: no per-tile cast, no per-tile
    # W normalization.  Contract the feature dim of BOTH operands (no W.T).
    raw = lax.dot_general(
        xn_ref[...], w_ref[...],
        dimension_numbers=(((1,), (1,)), ((), ())),
        preferred_element_type=jnp.float32,
    )                                   # (B, TILE_C) f32
    # Output-side per-class inverse-norm scaling (f32, zero for padded rows).
    return raw * inv_ref[...]


def _adacos_logits_kernel(xn_ref, w_ref, inv_ref, o_ref):
    o_ref[...] = _cosine_tile(xn_ref, w_ref, inv_ref).astype(o_ref.dtype)


def _adacos_stats_kernel(label_ref, xn_ref, w_ref, inv_ref,
                         logits_ref, expsum_ref, costgt_ref,
                         *, s_old, num_classes, tile_c):
    j = pl.program_id(0)
    logits = _cosine_tile(xn_ref, w_ref, inv_ref)        # (B, TILE_C) f32
    logits_ref[...] = logits.astype(logits_ref.dtype)

    # Epilogue: one-hot with GLOBAL column offset; mask padded class columns.
    bsz = logits.shape[0]
    col0 = j * tile_c
    class_ids = col0 + lax.broadcasted_iota(jnp.int32, (bsz, tile_c), 1)
    one_hot = class_ids == label_ref[...]                 # (B, TILE_C)
    valid = class_ids < num_classes                       # C padding mask

    exp_term = jnp.exp(s_old * logits)                    # EUP, hidden under W DMA
    keep = jnp.logical_and(valid, jnp.logical_not(one_hot))
    expsum = jnp.where(keep, exp_term, 0.0).sum(axis=1, keepdims=True)   # (B,1)
    costgt = jnp.where(one_hot, logits, 0.0).sum(axis=1, keepdims=True)  # (B,1)

    # Per-tile partial sums (no grid-resident accumulator) so the class axis
    # can be "parallel" and shard across TensorCores on v7x.
    expsum_ref[...] = expsum[None]                        # (1, B, 1)
    costgt_ref[...] = costgt[None]                        # (1, B, 1)


# ---------------------------------------------------------------------------
# wrapper
# ---------------------------------------------------------------------------
def adacos_forward(x, W, label=None, s=None, tile_c=None,
                   compute_dtype=jnp.float32):
    """AdaCos forward.

    x: (B, F) float, W: (C, F) float, label: optional (B,) int.
    Returns cosine logits (B, C) if label is None; otherwise (output, new_s)
    where output = new_s * logits and new_s is the adapted scale (the value the
    PyTorch module writes back into self.s).
    """
    B, F = x.shape
    C, F2 = W.shape
    assert F == F2
    if s is None:
        s = math.sqrt(2.0) * math.log(C - 1)      # module's initial scale

    x_item = jnp.dtype(compute_dtype).itemsize
    w_item = x_item

    cap = _vmem_capacity_bytes()
    budget = min(int(cap * 0.4), 48 << 20)        # v7x (64 MiB) safe, big elsewhere

    c_pad = _round_up(C, 128)                     # pad only to a 128 multiple
    if tile_c is None:
        tile_c = _pick_tile_c(c_pad, B, F, x_item, w_item, budget)
    elif c_pad % tile_c:
        c_pad = _round_up(C, tile_c)              # user-forced tile: pad further
    n_tiles = c_pad // tile_c

    # Per-class inverse norms, computed once in f32 from the original weights;
    # zero for padded class rows so padded logits columns are exactly 0.
    w32 = W.astype(jnp.float32)
    inv_norm = 1.0 / jnp.maximum(jnp.sqrt(jnp.sum(w32 * w32, axis=1)), _EPS)
    inv_norm = jnp.pad(inv_norm, (0, c_pad - C)).reshape(1, c_pad)

    # Pad + cast fused by XLA: W is streamed from HBM at compute_dtype width.
    W_in = jnp.pad(W, ((0, c_pad - C), (0, 0))).astype(compute_dtype)

    xn = _l2_normalize_rows(x, compute_dtype)     # normalize x once, reuse per tile
    # TODO(synk): for very large B, add a "parallel" batch grid axis so the
    # resident xn / logits tiles don't crowd VMEM (matters on v7x's 64 MiB).

    work = _working_set_bytes(B, F, tile_c, x_item, w_item)
    vmem_limit = int(max(16 << 20, min(int(cap * 0.7), work + (4 << 20))))
    cparams = pltpu.CompilerParams(
        dimension_semantics=("parallel",),        # disjoint out blocks per tile
        vmem_limit_bytes=vmem_limit,
    )

    if label is None:
        logits = pl.pallas_call(
            _adacos_logits_kernel,
            out_shape=jax.ShapeDtypeStruct((B, c_pad), jnp.float32),
            grid=(n_tiles,),
            in_specs=[
                pl.BlockSpec((B, F), lambda j: (0, 0)),
                pl.BlockSpec((tile_c, F), lambda j: (j, 0)),
                pl.BlockSpec((1, tile_c), lambda j: (0, j)),
            ],
            out_specs=pl.BlockSpec((B, tile_c), lambda j: (0, j)),
            compiler_params=cparams,
        )(xn, W_in, inv_norm)
        return logits[:, :C] if c_pad != C else logits

    label2d = label.astype(jnp.int32).reshape(B, 1)
    kernel = functools.partial(
        _adacos_stats_kernel, s_old=float(s), num_classes=C, tile_c=tile_c)
    logits_pad, exp_part, cos_part = pl.pallas_call(
        kernel,
        out_shape=(
            jax.ShapeDtypeStruct((B, c_pad), jnp.float32),      # cosine logits
            jax.ShapeDtypeStruct((n_tiles, B, 1), jnp.float32),  # partial sum exp(s*logit)
            jax.ShapeDtypeStruct((n_tiles, B, 1), jnp.float32),  # partial target cos
        ),
        grid=(n_tiles,),
        in_specs=[
            pl.BlockSpec((B, 1), lambda j: (0, 0)),
            pl.BlockSpec((B, F), lambda j: (0, 0)),
            pl.BlockSpec((tile_c, F), lambda j: (j, 0)),
            pl.BlockSpec((1, tile_c), lambda j: (0, j)),
        ],
        out_specs=[
            pl.BlockSpec((B, tile_c), lambda j: (0, j)),
            pl.BlockSpec((1, B, 1), lambda j: (j, 0, 0)),
            pl.BlockSpec((1, B, 1), lambda j: (j, 0, 0)),
        ],
        compiler_params=cparams,
    )(label2d, xn, W_in, inv_norm)

    logits = logits_pad[:, :C] if c_pad != C else logits_pad
    exp_row_sum = jnp.sum(exp_part[:, :, 0], axis=0)   # (B,) non-target exp sum
    cos_target = jnp.sum(cos_part[:, :, 0], axis=0)    # (B,) cos at target class

    # TODO(synk): the O(B) median / log / cos scale update and the final scalar
    # rescale are data-dependent on full reductions (inherently a second pass);
    # they are tiny and kept in plain JAX rather than a Pallas kernel.
    B_avg = jnp.sum(exp_row_sum) / B
    theta_t = jnp.arccos(jnp.clip(cos_target, -1.0 + 1e-07, 1.0 - 1e-07))
    theta_med = jnp.sort(theta_t)[(B - 1) // 2]        # torch.median = lower median
    new_s = jnp.log(B_avg) / jnp.cos(jnp.minimum(math.pi / 4.0, theta_med))
    output = new_s * logits
    return output, new_s


def xavier_uniform(key, shape):
    # nn.init.xavier_uniform_ for (num_classes, num_features):
    # fan_in = num_features, fan_out = num_classes
    fan_out, fan_in = shape
    bound = math.sqrt(6.0 / (fan_in + fan_out))
    return jax.random.uniform(key, shape, jnp.float32, -bound, bound)


if __name__ == "__main__":
    num_features = 128
    num_classes = 300          # not a multiple of 128: exercises padding + mask
    batch = 8
    tile_c = 128               # forces a grid of 3 class tiles

    key = jax.random.PRNGKey(0)
    kx, kw, kl = jax.random.split(key, 3)
    x = jax.random.normal(kx, (batch, num_features), dtype=jnp.float32)
    W = xavier_uniform(kw, (num_classes, num_features))
    label = jax.random.randint(kl, (batch,), 0, num_classes, dtype=jnp.int32)

    # pure-JAX reference (AdaCos semantics)
    xn = x / jnp.maximum(jnp.linalg.norm(x, axis=1, keepdims=True), _EPS)
    wn = W / jnp.maximum(jnp.linalg.norm(W, axis=1, keepdims=True), _EPS)
    ref_logits = xn @ wn.T
    s0 = math.sqrt(2.0) * math.log(num_classes - 1)
    theta = jnp.arccos(jnp.clip(ref_logits, -1.0 + 1e-07, 1.0 - 1e-07))
    onehot = jax.nn.one_hot(label, num_classes, dtype=jnp.float32)
    B_avg = jnp.sum(jnp.where(onehot < 1, jnp.exp(s0 * ref_logits), 0.0)) / batch
    theta_t = theta[jnp.arange(batch), label]
    theta_med = jnp.sort(theta_t)[(batch - 1) // 2]    # torch lower median
    ref_s = jnp.log(B_avg) / jnp.cos(jnp.minimum(math.pi / 4.0, theta_med))
    ref_out = ref_s * ref_logits

    # label=None path: cosine logits (f32, explicit small tile -> 3-tile grid)
    logits = adacos_forward(x, W, label=None, tile_c=tile_c)
    jax.block_until_ready(logits)

    # labeled path: adaptively-scaled logits (+ the updated scale)
    out, new_s = adacos_forward(x, W, label=label, tile_c=tile_c)
    jax.block_until_ready(out)

    # bf16-streamed W + auto tile selection (looser tolerance for bf16 inputs)
    logits_bf16 = adacos_forward(x, W, label=None, compute_dtype=jnp.bfloat16)
    jax.block_until_ready(logits_bf16)

    assert jnp.allclose(logits, ref_logits, atol=1e-5), "logits mismatch"
    assert jnp.allclose(new_s, ref_s, atol=1e-3, rtol=1e-3), "scale mismatch"
    assert jnp.allclose(out, ref_out, atol=1e-3, rtol=1e-3), "output mismatch"
    assert jnp.allclose(logits_bf16, ref_logits, atol=5e-2), "bf16 logits mismatch"

    print("KERNEL_OK")
</pallas_src>

<mosaic_0001>
module attributes {stable_mosaic.version = 11 : i64} {
  func.func @_rownorm_kernel(%arg0: memref<8x128xf32, #tpu.memory_space<vmem>>, %arg1: memref<8x128xf32, #tpu.memory_space<vmem>>) attributes {dimension_semantics = [], scalar_prefetch = 0 : i64, scratch_operands = 0 : i64, tpu.core_type = #tpu.core_type<tc>} {
    %c0 = arith.constant 0 : index
    %c0_0 = arith.constant 0 : index
    %0 = vector.load %arg0[%c0, %c0_0] : memref<8x128xf32, #tpu.memory_space<vmem>>, vector<8x128xf32>
    %1 = arith.mulf %0, %0 : vector<8x128xf32>
    %cst = arith.constant dense<0.000000e+00> : vector<8xf32>
    %2 = vector.multi_reduction <add>, %1, %cst [1] : vector<8x128xf32> to vector<8xf32>
    %3 = vector.shape_cast %2 : vector<8xf32> to vector<8x1xf32>
    %4 = math.sqrt %3 : vector<8x1xf32>
    %cst_1 = arith.constant 9.99999996E-13 : f32
    %5 = vector.broadcast %cst_1 : f32 to vector<8x1xf32>
    %6 = arith.maximumf %4, %5 : vector<8x1xf32>
    %7 = vector.broadcast %6 : vector<8x1xf32> to vector<8x128xf32>
    %8 = arith.divf %0, %7 : vector<8x128xf32>
    %c0_2 = arith.constant 0 : index
    %c0_3 = arith.constant 0 : index
    %9 = vector.load %arg1[%c0_2, %c0_3] : memref<8x128xf32, #tpu.memory_space<vmem>>, vector<8x128xf32>
    tpu.vector_store %arg1[%c0_2, %c0_3], %8 {strides = array<i32>} : memref<8x128xf32, #tpu.memory_space<vmem>>, vector<8x128xf32>,
    return
  }
}

</mosaic_0001>

<bundles_post_ra>
// kernel: tpu_custom_call.1
= control target key start
LH: loop header
LB: loop body
LE: loop exit
PB: predicated region body
PF: predicated region fallthrough
CT: control target
= control target key end

     0   :  { %6 = vsyncpa [#allocation3], 0  ;;  %s141_s0 = inlined_call_operand.hbm [shape: f32[8,128], index: 0, kind: input, shape index: {}]   ;;  %s142_s1 = inlined_call_operand.hbm [shape: f32[8,128], index: 1, kind: output, shape index: {}]  }
   0x1   :  { %7 = vsyncpa [#allocation4], 0  ;;  %s105_s6 = smov [#allocation2]   ;;  %s57_s10 = scalar_lea.hbm %s141_s0, 128 }
   0x2   :  { %s14_s7 = sshll.u32 %s105_s6, 4  ;;  %p58_p0 = scmp.ne.s32.totalorder %s141_s0, %s57_s10  ;;  %s15_s7 = int_to_ptr.vmem [resolvable:$true] %s14_s7 }
   0x3   :  { %p61_p1 = scmp.lt.u32.totalorder %s57_s10, %s141_s0 }
   0x5   :  { %p63_p2 = pnand %p61_p1, %p58_p0 }
   0x7   :  { %66 = shalt.err (!%p63_p2)
}
   0x8   :  { %s67_s15 = scalar_lea.vmem %s15_s7, 128  ;;  %p72_p4 = scmp.lt.s32.totalorder %s15_s7, %s15_s7 }
   0x9   :  { %p68_p3 = scmp.ne.s32.totalorder %s15_s7, %s67_s15  ;;  %p73_p5 = scmp.lt.s32.totalorder %s67_s15, %s67_s15 }
   0xb   :  { %p74_p6 = por %p73_p5, %p72_p4 }
   0xd   :  { %p75_p7 = pnand %p74_p6, %p68_p3 }
   0xf   :  { %78 = shalt.err (!%p75_p7)
}
  0x10   :  { %17 = dma.hbm_to_vmem [thread:$0]  %s141_s0, 128, %s15_s7, [#allocation3]  }
  0x11   :  { %101 = dma.done.wait [#allocation3], 128  }
  0x12   :  { %102 = vsyncadd [#allocation3], 4294967168  ;;  %v21_v0 = vld [vmem:[#allocation2] sm:$0xff]  ;;  %s106_s18 = smov [#allocation5]  }
  0x13   :  { %v22_v1 = vmul.f32 %v21_v0, %v21_v0  ;;  %s42_s19 = sshll.u32 %s106_s18, 4  ;;  %s43_s19 = int_to_ptr.vmem [resolvable:$true] %s42_s19 }
  0x14   :  { %s79_s0 = scalar_lea.vmem %s43_s19, 128  ;;  %p84_p9 = scmp.lt.s32.totalorder %s43_s19, %s43_s19 }
  0x15   :  { %23 = vadd.xlane.f32.xlu0 %v22_v1  ;;  %p80_p8 = scmp.ne.s32.totalorder %s43_s19, %s79_s0  ;;  %p85_p10 = scmp.lt.s32.totalorder %s79_s0, %s79_s0 }
  0x17   :  { %p86_p11 = por %p85_p10, %p84_p9 }
  0x19   :  { %p87_p12 = pnand %p86_p11, %p80_p8 }
  0xa2   :  { %v24_v2 = vpop.xlane.xlu0 %23 }
  0xa3   :  { %53 = vrsqrt.f32 %v24_v2  ;;  %vm27_vm0 = vcmp.eq.f32.partialorder %v24_v2, inf  ;;  %v30_v5 = vand.u32 2147483648, %v24_v2  ;;  %vm29_vm1 = vcmp.eq.f32.partialorder %v24_v2, 0.0 }
  0xad   :  { %v54_v3 = vpop.eup %53 }
  0xae   :  { %v26_v4 = vmul.f32 %v54_v3, %v24_v2 }
  0xb0   :  { %v28_v6 = vsel %vm27_vm0, %v24_v2, %v26_v4 }
  0xb1   :  { %v31_v7 = vsel %vm29_vm1, %v30_v5, %v28_v6 }
  0xb2   :  { %v32_v8 = vmax.f32 %v31_v7, 1e-12 }
  0xb4   :  { %55 = vrcp.f32 %v32_v8 }
  0xbe   :  { %v56_v9 = vpop.eup %55 }
  0xbf   :  { %v34_v10 = vmul.f32 %v56_v9, %v21_v0 }
  0xc1   :  { %35 = vst [vmem:[#allocation5] sm:$0xff] %v34_v10 }
  0xc2   :  { %90 = shalt.err (!%p87_p12)
}
  0xc3   :  { %s91_s22 = scalar_lea.hbm %s142_s1, 128 }
  0xc4   :  { %p92_p13 = scmp.ne.s32.totalorder %s142_s1, %s91_s22  ;;  %p95_p0 = scmp.lt.u32.totalorder %s91_s22, %s142_s1 }
  0xc6   :  { %p97_p1 = pnand %p95_p0, %p92_p13 }
  0xc8   :  { %100 = shalt.err (!%p97_p1)
}
  0xc9   :  { %45 = dma.vmem_to_hbm [thread:$0]  %s43_s19, 128, %s142_s1, [#allocation4]  }
  0xca   :  { %103 = dma.done.wait [#allocation4], 128  }
  0xcb   :  { %104 = vsyncadd [#allocation4], 4294967168 }
  0xcc   :  { %49 = vsyncpa [#allocation3], 1 }
  0xcd   :  { %50 = vsyncpa [#allocation4], 1 }

</bundles_post_ra>
